<compile_context>
chip_gen: v5e
topology: v5e:2x2
jax: 0.10.0
libtpu: 0.0.40
codegen_flags: <defaults>
</compile_context>

<pallas_src>
import functools

import jax
import jax.numpy as jnp
from jax.experimental import pallas as pl
from jax.experimental.pallas import tpu as pltpu

EPSILON = 1e-8
_LANES = 128            # lane-dense last dim (full vreg width)
_SUBLANES = 8           # f32 sublane count -> (8, 128) accumulator tile
_MAX_TILE_ROWS = 4096   # 4096 * 128 * 4 B = 2 MiB per input per grid step


def _smape_partial_kernel(x_ref, y_ref, o_ref, *, eps):
    # o_ref: (8, 128) f32 partial-sum accumulator. Its block index depends
    # only on the leading ("parallel") grid axis, so it stays resident in
    # VMEM across the trailing "arbitrary" (reduction) axis.
    @pl.when(pl.program_id(1) == 0)
    def _():
        o_ref[...] = jnp.zeros_like(o_ref)

    x = x_ref[...].astype(jnp.float32)      # cast in-register (no HBM copy)
    y = y_ref[...].astype(jnp.float32)
    r = jnp.abs(x - y) / (jnp.abs(x) + jnp.abs(y) + jnp.float32(eps))
    # Collapse (tile_rows, 128) -> (8, 128) using only leading-axis VPU adds.
    o_ref[...] += jnp.sum(r.reshape(-1, _SUBLANES, _LANES), axis=0)


def smape_loss(x, y, *, epsilon=EPSILON, max_tile_rows=_MAX_TILE_ROWS):
    """mean(|x - y| / (|x| + |y| + eps)) over all elements (SMAPE / rel-L1)."""
    assert x.shape == y.shape
    n_elem = x.size
    assert n_elem > 0

    # Flatten to 1-D (bitcast/free for contiguous inputs), then view lane-dense.
    xf = x.reshape(-1)
    yf = y.reshape(-1)

    rows_raw = pl.cdiv(n_elem, _LANES)
    if rows_raw <= max_tile_rows:
        # Single block covering everything; rows rounded to a sublane multiple.
        tile_rows = pl.cdiv(rows_raw, _SUBLANES) * _SUBLANES
        rows = tile_rows
        splits, blocks_per_split = 1, 1
    else:
        # Multi-block: shard row-blocks across 2 "parallel" splits (both TCs
        # on v7x), reduction runs along the trailing "arbitrary" axis.
        tile_rows = max_tile_rows
        splits = 2
        per_split_rows = tile_rows * pl.cdiv(rows_raw, tile_rows * splits)
        rows = splits * per_split_rows
        blocks_per_split = per_split_rows // tile_rows

    padded = rows * _LANES
    if padded != n_elem:
        # Zero pad only the ragged tail: 0 / (0 + 0 + eps) == 0, so padded
        # elements contribute nothing to the sum (mean divides by n_elem).
        # TODO(synk): mask the tail in-kernel (iota vs n_elem) to avoid this
        # pad copy for very large, non-(8*128)-aligned inputs.
        xf = jnp.pad(xf, (0, padded - n_elem))
        yf = jnp.pad(yf, (0, padded - n_elem))
    x2 = xf.reshape(rows, _LANES)
    y2 = yf.reshape(rows, _LANES)

    in_map = lambda c, i: (c * blocks_per_split + i, 0)
    bytes_in = x2.size * x2.dtype.itemsize + y2.size * y2.dtype.itemsize

    partials = pl.pallas_call(
        functools.partial(_smape_partial_kernel, eps=epsilon),
        out_shape=jax.ShapeDtypeStruct((splits, _SUBLANES, _LANES), jnp.float32),
        grid_spec=pltpu.PrefetchScalarGridSpec(
            num_scalar_prefetch=0,
            grid=(splits, blocks_per_split),
            in_specs=[
                pl.BlockSpec((tile_rows, _LANES), in_map),
                pl.BlockSpec((tile_rows, _LANES), in_map),
            ],
            # Leading dim squeezed: kernel sees an (8, 128) accumulator block.
            out_specs=pl.BlockSpec((None, _SUBLANES, _LANES),
                                   lambda c, i: (c, 0, 0)),
        ),
        compiler_params=pltpu.CompilerParams(
            dimension_semantics=("parallel", "arbitrary"),
        ),
        cost_estimate=pl.CostEstimate(
            flops=6 * n_elem,
            transcendentals=0,
            bytes_accessed=bytes_in + splits * _SUBLANES * _LANES * 4,
        ),
    )(x2, y2)

    # One final tiny cross-lane reduction outside the kernel.
    return jnp.sum(partials) / jnp.float32(n_elem)


if __name__ == "__main__":
    key = jax.random.PRNGKey(0)
    kx, ky = jax.random.split(key)

    def ref_loss(a, b):
        a32 = a.astype(jnp.float32)
        b32 = b.astype(jnp.float32)
        return jnp.mean(jnp.abs(a32 - b32) /
                        (jnp.abs(a32) + jnp.abs(b32) + EPSILON))

    # (N, 3) pred/label pairs, matching the PyTorch module's convention.
    cases = [
        (128, jnp.float32, {}),                      # ragged tail -> pad path
        (1024, jnp.float32, {}),                     # 3*1024 = 24*128 -> zero-copy single block
        (1024, jnp.float32, dict(max_tile_rows=8)),  # forces the 2-split multi-block path
        (512, jnp.bfloat16, {}),                     # bf16 in-register upcast path
    ]
    for n, dt, kwargs in cases:
        xa = jax.random.normal(kx, (n, 3), dtype=jnp.float32).astype(dt)
        ya = jax.random.normal(ky, (n, 3), dtype=jnp.float32).astype(dt)
        out = jax.block_until_ready(smape_loss(xa, ya, **kwargs))
        ref = ref_loss(xa, ya)
        assert jnp.allclose(out, ref, rtol=1e-5, atol=1e-6), (n, dt, kwargs, out, ref)

    print("KERNEL_OK")
</pallas_src>

<mosaic_0001>
module attributes {stable_mosaic.version = 11 : i64} {
  func.func @_smape_partial_kernel(%arg0: i32, %arg1: i32, %arg2: memref<8x128xf32, #tpu.memory_space<vmem>>, %arg3: memref<8x128xf32, #tpu.memory_space<vmem>>, %arg4: memref<1x8x128xf32, #tpu.memory_space<vmem>>) attributes {dimension_semantics = [#tpu.dimension_semantics<parallel>, #tpu.dimension_semantics<arbitrary>], iteration_bounds = array<i64: 1, 1>, scalar_prefetch = 0 : i64, scratch_operands = 0 : i64, tpu.core_type = #tpu.core_type<tc>, window_params = [{transform_indices = @transform_0, window_bounds = array<i64: 8, 128>}, {transform_indices = @transform_1, window_bounds = array<i64: 8, 128>}, {transform_indices = @transform_2, window_bounds = array<i64: 1, 8, 128>}]} {
    %c0_i32 = arith.constant 0 : i32
    %0 = arith.cmpi eq, %arg1, %c0_i32 : i32
    %1 = arith.extui %0 : i1 to i32
    %c0_i32_0 = arith.constant 0 : i32
    %2 = arith.cmpi ne, %1, %c0_i32_0 : i32
    scf.if %2 {
      %cst_11 = arith.constant 0.000000e+00 : f32
      %21 = vector.broadcast %cst_11 : f32 to vector<8x128xf32>
      %c0_12 = arith.constant 0 : index
      %c0_13 = arith.constant 0 : index
      %c0_14 = arith.constant 0 : index
      %22 = vector.load %arg4[%c0_12, %c0_13, %c0_14] : memref<1x8x128xf32, #tpu.memory_space<vmem>>, vector<1x8x128xf32>
      %23 = vector.shape_cast %22 : vector<1x8x128xf32> to vector<8x128xf32>
      %24 = vector.shape_cast %21 : vector<8x128xf32> to vector<1x8x128xf32>
      tpu.vector_store %arg4[%c0_12, %c0_13, %c0_14], %24 {strides = array<i32>} : memref<1x8x128xf32, #tpu.memory_space<vmem>>, vector<1x8x128xf32>,
    } else {
    }
    %c0 = arith.constant 0 : index
    %c0_1 = arith.constant 0 : index
    %3 = vector.load %arg2[%c0, %c0_1] : memref<8x128xf32, #tpu.memory_space<vmem>>, vector<8x128xf32>
    %c0_2 = arith.constant 0 : index
    %c0_3 = arith.constant 0 : index
    %4 = vector.load %arg3[%c0_2, %c0_3] : memref<8x128xf32, #tpu.memory_space<vmem>>, vector<8x128xf32>
    %5 = arith.subf %3, %4 : vector<8x128xf32>
    %6 = math.absf %5 : vector<8x128xf32>
    %7 = math.absf %3 : vector<8x128xf32>
    %8 = math.absf %4 : vector<8x128xf32>
    %9 = arith.addf %7, %8 : vector<8x128xf32>
    %cst = arith.constant 9.99999993E-9 : f32
    %10 = vector.broadcast %cst : f32 to vector<8x128xf32>
    %11 = arith.addf %9, %10 : vector<8x128xf32>
    %12 = arith.divf %6, %11 : vector<8x128xf32>
    %c0_4 = arith.constant 0 : index
    %c0_5 = arith.constant 0 : index
    %c0_6 = arith.constant 0 : index
    %13 = vector.load %arg4[%c0_4, %c0_5, %c0_6] : memref<1x8x128xf32, #tpu.memory_space<vmem>>, vector<1x8x128xf32>
    %14 = vector.shape_cast %13 : vector<1x8x128xf32> to vector<8x128xf32>
    %15 = vector.shape_cast %12 : vector<8x128xf32> to vector<1x8x128xf32>
    %cst_7 = arith.constant dense<0.000000e+00> : vector<8x128xf32>
    %16 = vector.multi_reduction <add>, %15, %cst_7 [0] : vector<1x8x128xf32> to vector<8x128xf32>
    %17 = arith.addf %14, %16 : vector<8x128xf32>
    %c0_8 = arith.constant 0 : index
    %c0_9 = arith.constant 0 : index
    %c0_10 = arith.constant 0 : index
    %18 = vector.load %arg4[%c0_8, %c0_9, %c0_10] : memref<1x8x128xf32, #tpu.memory_space<vmem>>, vector<1x8x128xf32>
    %19 = vector.shape_cast %18 : vector<1x8x128xf32> to vector<8x128xf32>
    %20 = vector.shape_cast %17 : vector<8x128xf32> to vector<1x8x128xf32>
    tpu.vector_store %arg4[%c0_8, %c0_9, %c0_10], %20 {strides = array<i32>} : memref<1x8x128xf32, #tpu.memory_space<vmem>>, vector<1x8x128xf32>,
    return
  }
  func.func @transform_0(%arg0: i32, %arg1: i32) -> (i32, i32) {
    %c1_i32 = arith.constant 1 : i32
    %0 = arith.muli %arg0, %c1_i32 : i32
    %1 = arith.addi %0, %arg1 : i32
    %c0_i32 = arith.constant 0 : i32
    %c0_i32_0 = arith.constant 0 : i32
    return %1, %c0_i32 : i32, i32
  }
  func.func @transform_1(%arg0: i32, %arg1: i32) -> (i32, i32) {
    %c1_i32 = arith.constant 1 : i32
    %0 = arith.muli %arg0, %c1_i32 : i32
    %1 = arith.addi %0, %arg1 : i32
    %c0_i32 = arith.constant 0 : i32
    %c0_i32_0 = arith.constant 0 : i32
    return %1, %c0_i32 : i32, i32
  }
  func.func @transform_2(%arg0: i32, %arg1: i32) -> (i32, i32, i32) {
    %c0_i32 = arith.constant 0 : i32
    %c0_i32_0 = arith.constant 0 : i32
    %c0_i32_1 = arith.constant 0 : i32
    return %arg0, %c0_i32, %c0_i32_0 : i32, i32, i32
  }
}

</mosaic_0001>

<bundles_post_ra>
// kernel: tpu_custom_call.1
= control target key start
LH: loop header
LB: loop body
LE: loop exit
PB: predicated region body
PF: predicated region fallthrough
CT: control target
= control target key end

     0   :  { %7 = vsyncpa [#allocation3], 0  ;;  %s209_s0 = inlined_call_operand.hbm [shape: f32[8,128], index: 0, kind: input, shape index: {}]   ;;  %s210_s1 = inlined_call_operand.hbm [shape: f32[8,128], index: 1, kind: input, shape index: {}]   ;;  %s211_s2 = inlined_call_operand.hbm [shape: f32[1,8,128], index: 2, kind: output, shape index: {}]  }
   0x1   :  { %8 = vsyncpa [#allocation6], 0 }
   0x2   :  { %9 = vsyncpa [#allocation4], 0  ;;  %s18_s11 = sshll.u32 %s209_s0, 4  ;;  %s182_s12 = smov [#allocation2]   ;;  %s19_s11 = int_to_ptr.hbm [resolvable:$true] %s18_s11 }
   0x3   :  { %s20_s13 = sshll.u32 %s182_s12, 4  ;;  %s32_s16 = sshll.u32 %s210_s1, 4  ;;  %s21_s13 = int_to_ptr.vmem [resolvable:$true] %s20_s13  ;;  %s33_s16 = int_to_ptr.hbm [resolvable:$true] %s32_s16 }
   0x4   :  { %23 = dma.hbm_to_vmem [thread:$0]  %s19_s11, 128, %s21_s13, [#allocation3]  }
   0x5   :  { %s183_s17 = smov [#allocation5]  }
   0x6   :  { %s34_s18 = sshll.u32 %s183_s17, 4  ;;  %s35_s18 = int_to_ptr.vmem [resolvable:$true] %s34_s18 }
   0x7   :  { %37 = dma.hbm_to_vmem [thread:$0]  %s33_s16, 128, %s35_s18, [#allocation6]  }
   0x8   :  { %176 = dma.done.wait [#allocation3], 128  }
   0x9   :  { %177 = vsyncadd [#allocation3], 4294967168 }
   0xa   :  { %178 = dma.done.wait [#allocation6], 128  }
   0xb   :  { %179 = vsyncadd [#allocation6], 4294967168  ;;  %v53_v0 = vld [vmem:[#allocation2] sm:$0xff]  ;;  %v54_v1 = vld [vmem:[#allocation5] sm:$0xff]  ;;  %s184_s0 = smov [#allocation7]   ;;  %s87_s21 = sshll.u32 %s211_s2, 4  ;;  %s88_s21 = int_to_ptr.hbm [resolvable:$true] %s87_s21 }
   0xc   :  { %v57_v2 = vand.u32 2147483647, %v53_v0  ;;  %v58_v3 = vand.u32 2147483647, %v54_v1  ;;  %v55_v8 = vsub.f32 %v53_v0, %v54_v1  ;;  %s85_s1 = sshll.u32 %s184_s0, 4  ;;  %s86_s1 = int_to_ptr.vmem [resolvable:$true] %s85_s1 }
   0xe   :  { %v59_v4 = vadd.f32 %v58_v3, %v57_v2  ;;  %v56_v14 = vand.u32 2147483647, %v55_v8 }
  0x10   :  { %v60_v5 = vadd.f32 1e-08, %v59_v4 }
  0x12   :  { %102 = vrcp.f32 %v60_v5  ;;  %v72_v9 = vand.u32 2147483648, %v60_v5  ;;  %vm66_vm0 = vweird.f32 %v60_v5  ;;  %v70_v11 = vand.u32 2147483647, %v60_v5 }
  0x14   :  { %v73_v13 = vor.u32 1.1754944e-38, %v72_v9  ;;  %vm71_vm3 = vcmp.eq.f32.partialorder %v70_v11, 8.507059e+37 }
  0x18   :  { %v103_v6 = vpop.eup %102 }
  0x19   :  { %v62_v7 = vmul.f32 %v103_v6, %v60_v5  ;;  %vm67_vm1 = vweird.f32 %v103_v6 }
  0x1a   :  { %vm68_vm2 = vmor %vm66_vm0, %vm67_vm1 }
  0x1b   :  { %v63_v10 = vsub.f32 1.0, %v62_v7 }
  0x1d   :  { %v64_v12 = vmul.f32 %v103_v6, %v63_v10 }
  0x1f   :  { %v65_v15 = vadd.f32 %v103_v6, %v64_v12 }
  0x21   :  { %v69_v16 = vsel %vm68_vm2, %v103_v6, %v65_v15 }
  0x22   :  { %v74_v17 = vsel %vm71_vm3, %v73_v13, %v69_v16 }
  0x23   :  { %v75_v18 = vmul.f32 %v74_v17, %v56_v14 }
  0x25   :  { %79 = vst [vmem:[#allocation7] sm:$0xff] %v75_v18 }
  0x26   :  { %90 = dma.vmem_to_hbm [thread:$0]  %s86_s1, 128, %s88_s21, [#allocation4]  }
  0x27   :  { %180 = dma.done.wait [#allocation4], 128  }
  0x28   :  { %181 = vsyncadd [#allocation4], 4294967168 }
  0x29   :  { %95 = vsyncpa [#allocation3], 1 }
  0x2a   :  { %96 = vsyncpa [#allocation6], 1 }
  0x2b   :  { %97 = vsyncpa [#allocation4], 1 }

</bundles_post_ra>
